<compile_context>
chip_gen: v7x
topology: tpu7x:2x2x1
jax: 0.10.0
libtpu: 0.0.40
codegen_flags: <defaults>
</compile_context>

<pallas_src>
import jax
import jax.numpy as jnp
from jax.experimental import pallas as pl
from jax.experimental.pallas import tpu as pltpu

_LANE = 128
_SUBLANE = 8


def _physical_vmem_bytes():
    """Per-core physical VMEM; conservative fallback if the query fails."""
    try:
        info = pltpu.get_tpu_info()
        for attr in ("vmem_capacity_bytes", "vmem_bytes", "vmem_size_bytes"):
            v = getattr(info, attr, None)
            if v:
                return int(v)
    except Exception:
        pass
    return 64 * 1024 * 1024  # v7x-class (smallest current VMEM) -> safe everywhere


def _divisors_desc(k):
    return [d for d in range(k, 0, -1) if k % d == 0]


def _pick_tiling(n, k, d, in_bytes, out_bytes, vmem_limit_bytes, sub, allow_k_split):
    """Pick (tile_n, n_steps, k_chunk, k_steps) so double-buffered tiles fit VMEM."""
    budget = int(0.6 * vmem_limit_bytes)
    f32_temp = 4 * d * 4  # acc scratch + bundle/part f32 temporaries, per row

    def cap_for(kc):
        per_row = (2 * kc * d * in_bytes   # double-buffered mailbox chunk
                   + 2 * d * in_bytes      # double-buffered h
                   + 2 * d * out_bytes     # double-buffered out
                   + f32_temp)
        return max(sub, (budget // per_row) // sub * sub)

    n_rounded = pl.cdiv(n, sub) * sub
    target = min(512, n_rounded)           # keep node tiles >= ~512 rows when possible

    k_chunk = k
    cap = cap_for(k)
    if allow_k_split and cap < target:
        for kc in _divisors_desc(k):
            c = cap_for(kc)
            if c >= target:
                k_chunk, cap = kc, c
                break
        else:
            k_chunk, cap = 1, cap_for(1)

    cap = min(cap, n_rounded, 8192)
    # Megacore: make sure the 'parallel' node axis has >= 2 steps (v7x has 2 TCs).
    n_steps = pl.cdiv(n, cap)
    if n_steps < 2 and n > sub:
        n_steps = 2
    tile_n = pl.cdiv(pl.cdiv(n, n_steps), sub) * sub
    n_steps = pl.cdiv(n, tile_n)
    return tile_n, n_steps, k_chunk, k // k_chunk


def _make_kernel(k, k_chunk, d, flat, aggr_type, apply_relu, norm, chunked):
    inv_k = 1.0 / float(k)
    is_mean = (aggr_type == "mean")

    def _slice(m_ref, j):
        if flat:
            # lane-aligned whole-vreg column slab (d % 128 == 0, j*d static)
            return m_ref[:, j * d:(j + 1) * d]
        return m_ref[:, j, :]

    def _chunk_reduce(m_ref):
        # Slice-wise accumulation: pure VALU adds/maxes on (TN, D) slabs; avoids
        # materializing the whole tile in f32 and cross-sublane reductions.
        if is_mean:
            part = _slice(m_ref, 0).astype(jnp.float32)
            for j in range(1, k_chunk):
                part = part + _slice(m_ref, j).astype(jnp.float32)
        else:
            part = _slice(m_ref, 0)                 # compares in native dtype
            for j in range(1, k_chunk):
                part = jnp.maximum(part, _slice(m_ref, j))
            part = part.astype(jnp.float32)         # one cast per chunk
        return part

    def _finish(c, h_ref, out_ref):
        bundle = h_ref[...].astype(jnp.float32) + c
        ssq = jnp.sum(bundle * bundle, axis=-1, keepdims=True)
        # F.normalize(p=2, dim=1): x / max(||x||, 1e-12) == x * rsqrt(max(ssq, 1e-24))
        bundle = bundle * jax.lax.rsqrt(jnp.maximum(ssq, 1e-24))
        if apply_relu:
            bundle = jnp.maximum(bundle, 0.0)
        if norm != 1.0:
            bundle = bundle * norm
        out_ref[...] = bundle.astype(out_ref.dtype)

    if not chunked:
        def kernel(m_ref, h_ref, out_ref):
            part = _chunk_reduce(m_ref)
            c = part * inv_k if is_mean else part
            _finish(c, h_ref, out_ref)
        return kernel

    def kernel(m_ref, h_ref, out_ref, acc_ref):
        kc_idx = pl.program_id(1)
        part = _chunk_reduce(m_ref)

        @pl.when(kc_idx == 0)
        def _():
            acc_ref[...] = part

        @pl.when(kc_idx > 0)
        def _():
            if is_mean:
                acc_ref[...] = acc_ref[...] + part
            else:
                acc_ref[...] = jnp.maximum(acc_ref[...], part)

        @pl.when(kc_idx == pl.num_programs(1) - 1)
        def _():
            c = acc_ref[...] * inv_k if is_mean else acc_ref[...]
            _finish(c, h_ref, out_ref)

    return kernel


def graphsage_layer_forward(h, mailbox_m, *, aggr_type="mean", activation="relu",
                            norm=1.0, tile_n=None, k_chunk=None):
    """Fused reducer + UpdateModule of ActivationGraphSageLayer (eval mode).

    h:          [N, D] node features (DGL g.ndata['h'], post-dropout, pre-message).
    mailbox_m:  [N, K, D] neighbour messages (DGL copy_src mailbox 'm').
    Returns {'h': [N, D]} updated node features.
    """
    assert aggr_type in ("mean", "max"), aggr_type
    n, d = h.shape
    n_m, k, d_m = mailbox_m.shape
    assert n_m == n and d_m == d, (h.shape, mailbox_m.shape)
    assert h.dtype == mailbox_m.dtype

    in_bytes = jnp.dtype(h.dtype).itemsize
    out_bytes = in_bytes
    # dtype-aware minimum sublane tile: (8,128) f32, (16,128) bf16, (32,128) int8/fp8
    sub = _SUBLANE * max(1, 4 // in_bytes)

    # Lane-aligned fast path: view the mailbox as [N, K*D] (free reshape of a
    # contiguous array) so each per-neighbour slice is a whole-vreg column slab.
    flat = (d % _LANE == 0)

    # Scoped VMEM limit derived from the chip: ~0.75 of physical.
    vmem_limit = int(_physical_vmem_bytes()) * 3 // 4

    a_tile_n, n_steps, a_kc, k_steps = _pick_tiling(
        n, k, d, in_bytes, out_bytes, vmem_limit, sub, allow_k_split=flat)

    if tile_n is not None:
        a_tile_n = max(sub, pl.cdiv(int(tile_n), sub) * sub)
        n_steps = pl.cdiv(n, a_tile_n)
    tile_n = a_tile_n

    if k_chunk is not None:
        k_chunk = int(k_chunk)
        assert flat and k % k_chunk == 0, (flat, k, k_chunk)
        a_kc = k_chunk
        k_steps = k // k_chunk
    kc = a_kc
    chunked = k_steps > 1

    kernel = _make_kernel(k, kc, d, flat, aggr_type, activation == "relu",
                          float(norm), chunked)

    m_in = mailbox_m.reshape(n, k * d) if flat else mailbox_m

    if chunked:
        grid = (n_steps, k_steps)
        m_spec = pl.BlockSpec((tile_n, kc * d), lambda i, j: (i, j))
        h_spec = pl.BlockSpec((tile_n, d), lambda i, j: (i, 0))
        o_spec = pl.BlockSpec((tile_n, d), lambda i, j: (i, 0))
        scratch = [pltpu.VMEM((tile_n, d), jnp.float32)]
        semantics = ("parallel", "arbitrary")
    else:
        grid = (n_steps,)
        if flat:
            m_spec = pl.BlockSpec((tile_n, k * d), lambda i: (i, 0))
        else:
            # Fallback (D not a multiple of 128): full-dim (K, D) trailing block.
            m_spec = pl.BlockSpec((tile_n, k, d), lambda i: (i, 0, 0))
        h_spec = pl.BlockSpec((tile_n, d), lambda i: (i, 0))
        o_spec = pl.BlockSpec((tile_n, d), lambda i: (i, 0))
        scratch = []
        semantics = ("parallel",)

    cost = pl.CostEstimate(
        flops=int(n * k * d + 6 * n * d),
        transcendentals=int(n),
        bytes_accessed=int(n * k * d * in_bytes + n * d * in_bytes + n * d * out_bytes),
    )

    out = pl.pallas_call(
        kernel,
        out_shape=jax.ShapeDtypeStruct((n, d), h.dtype),
        grid_spec=pltpu.PrefetchScalarGridSpec(
            num_scalar_prefetch=0,
            grid=grid,
            in_specs=[m_spec, h_spec],
            out_specs=o_spec,
            scratch_shapes=scratch,
        ),
        compiler_params=pltpu.CompilerParams(
            dimension_semantics=semantics,
            vmem_limit_bytes=int(vmem_limit),
        ),
        cost_estimate=cost,
    )(m_in, h)

    return {"h": out}


def _reference(h, m, aggr_type, activation, norm):
    """Pure-JAX reference of the fused forward (reducer + UpdateModule)."""
    c = jnp.mean(m, axis=1) if aggr_type == "mean" else jnp.max(m, axis=1)
    bundle = h + c
    l2 = jnp.maximum(jnp.sqrt(jnp.sum(bundle * bundle, axis=1, keepdims=True)), 1e-12)
    bundle = bundle / l2
    if activation == "relu":
        bundle = jnp.maximum(bundle, 0.0)
    return bundle * norm


if __name__ == "__main__":
    key = jax.random.PRNGKey(0)
    k_h, k_idx, k_h2, k_idx2, k_h3, k_idx3, k_h4, k_idx4 = jax.random.split(key, 8)

    # Check 1: lane-dense shapes, mean aggregator (the hot path: flat [N, K*D] view).
    N, K, D = 256, 8, 128
    h = jax.random.normal(k_h, (N, D), dtype=jnp.float32)
    nbr = jax.random.randint(k_idx, (N, K), 0, N)
    m = h[nbr]  # DGL copy_src: mailbox 'm' gathers source-node h
    out = graphsage_layer_forward(h, m, aggr_type="mean")
    h_new = jax.block_until_ready(out["h"])
    ref = _reference(h, m, "mean", "relu", 1.0)
    assert h_new.shape == (N, D)
    assert jnp.allclose(h_new, ref, atol=1e-5, rtol=1e-5)

    # Check 2: ragged N and D<128 (partial last block + masked store), max aggregator.
    N2, K2, D2 = 250, 8, 96
    h2 = jax.random.normal(k_h2, (N2, D2), dtype=jnp.float32)
    nbr2 = jax.random.randint(k_idx2, (N2, K2), 0, N2)
    m2 = h2[nbr2]
    out2 = graphsage_layer_forward(h2, m2, aggr_type="max")
    h2_new = jax.block_until_ready(out2["h"])
    ref2 = _reference(h2, m2, "max", "relu", 1.0)
    assert h2_new.shape == (N2, D2)
    assert jnp.allclose(h2_new, ref2, atol=1e-5, rtol=1e-5)

    # Check 3: forced K-chunking (accumulator scratch path) with a partial last N block.
    N3, K3, D3 = 200, 8, 128
    h3 = jax.random.normal(k_h3, (N3, D3), dtype=jnp.float32)
    nbr3 = jax.random.randint(k_idx3, (N3, K3), 0, N3)
    m3 = h3[nbr3]
    out3 = graphsage_layer_forward(h3, m3, aggr_type="mean", k_chunk=2)
    h3_new = jax.block_until_ready(out3["h"])
    ref3 = _reference(h3, m3, "mean", "relu", 1.0)
    assert h3_new.shape == (N3, D3)
    assert jnp.allclose(h3_new, ref3, atol=1e-5, rtol=1e-5)

    # Check 4: bf16 inputs (exercises dtype-aware (16,128) sublane rounding).
    N4, K4, D4 = 64, 8, 128
    h4 = jax.random.normal(k_h4, (N4, D4), dtype=jnp.float32).astype(jnp.bfloat16)
    nbr4 = jax.random.randint(k_idx4, (N4, K4), 0, N4)
    m4 = h4[nbr4]
    out4 = graphsage_layer_forward(h4, m4, aggr_type="mean")
    h4_new = jax.block_until_ready(out4["h"])
    ref4 = _reference(h4.astype(jnp.float32), m4.astype(jnp.float32), "mean", "relu", 1.0)
    assert h4_new.shape == (N4, D4) and h4_new.dtype == jnp.bfloat16
    assert jnp.allclose(h4_new.astype(jnp.float32), ref4, atol=2e-2, rtol=2e-2)

    print("KERNEL_OK")
</pallas_src>

<mosaic_0001>
module attributes {stable_mosaic.version = 11 : i64} {
  func.func @kernel(%arg0: i32, %arg1: memref<128x1024xf32, #tpu.memory_space<vmem>>, %arg2: memref<128x128xf32, #tpu.memory_space<vmem>>, %arg3: memref<128x128xf32, #tpu.memory_space<vmem>>) attributes {dimension_semantics = [#tpu.dimension_semantics<parallel>], iteration_bounds = array<i64: 2>, scalar_prefetch = 0 : i64, scratch_operands = 0 : i64, tpu.core_type = #tpu.core_type<tc>, window_params = [{transform_indices = @transform_0, window_bounds = array<i64: 128, 1024>}, {transform_indices = @transform_1, window_bounds = array<i64: 128, 128>}, {transform_indices = @transform_2, window_bounds = array<i64: 128, 128>}]} {
    %c0 = arith.constant 0 : index
    %c0_0 = arith.constant 0 : index
    %0 = vector.load %arg1[%c0, %c0_0] : memref<128x1024xf32, #tpu.memory_space<vmem>>, vector<128x128xf32>
    %c0_1 = arith.constant 0 : index
    %c128 = arith.constant 128 : index
    %1 = vector.load %arg1[%c0_1, %c128] : memref<128x1024xf32, #tpu.memory_space<vmem>>, vector<128x128xf32>
    %2 = arith.addf %0, %1 : vector<128x128xf32>
    %c0_2 = arith.constant 0 : index
    %c256 = arith.constant 256 : index
    %3 = vector.load %arg1[%c0_2, %c256] : memref<128x1024xf32, #tpu.memory_space<vmem>>, vector<128x128xf32>
    %4 = arith.addf %2, %3 : vector<128x128xf32>
    %c0_3 = arith.constant 0 : index
    %c384 = arith.constant 384 : index
    %5 = vector.load %arg1[%c0_3, %c384] : memref<128x1024xf32, #tpu.memory_space<vmem>>, vector<128x128xf32>
    %6 = arith.addf %4, %5 : vector<128x128xf32>
    %c0_4 = arith.constant 0 : index
    %c512 = arith.constant 512 : index
    %7 = vector.load %arg1[%c0_4, %c512] : memref<128x1024xf32, #tpu.memory_space<vmem>>, vector<128x128xf32>
    %8 = arith.addf %6, %7 : vector<128x128xf32>
    %c0_5 = arith.constant 0 : index
    %c640 = arith.constant 640 : index
    %9 = vector.load %arg1[%c0_5, %c640] : memref<128x1024xf32, #tpu.memory_space<vmem>>, vector<128x128xf32>
    %10 = arith.addf %8, %9 : vector<128x128xf32>
    %c0_6 = arith.constant 0 : index
    %c768 = arith.constant 768 : index
    %11 = vector.load %arg1[%c0_6, %c768] : memref<128x1024xf32, #tpu.memory_space<vmem>>, vector<128x128xf32>
    %12 = arith.addf %10, %11 : vector<128x128xf32>
    %c0_7 = arith.constant 0 : index
    %c896 = arith.constant 896 : index
    %13 = vector.load %arg1[%c0_7, %c896] : memref<128x1024xf32, #tpu.memory_space<vmem>>, vector<128x128xf32>
    %14 = arith.addf %12, %13 : vector<128x128xf32>
    %cst = arith.constant 1.250000e-01 : f32
    %15 = vector.broadcast %cst : f32 to vector<128x128xf32>
    %16 = arith.mulf %14, %15 : vector<128x128xf32>
    %c0_8 = arith.constant 0 : index
    %c0_9 = arith.constant 0 : index
    %17 = vector.load %arg2[%c0_8, %c0_9] : memref<128x128xf32, #tpu.memory_space<vmem>>, vector<128x128xf32>
    %18 = arith.addf %17, %16 : vector<128x128xf32>
    %19 = arith.mulf %18, %18 : vector<128x128xf32>
    %cst_10 = arith.constant dense<0.000000e+00> : vector<128xf32>
    %20 = vector.multi_reduction <add>, %19, %cst_10 [1] : vector<128x128xf32> to vector<128xf32>
    %21 = vector.shape_cast %20 : vector<128xf32> to vector<128x1xf32>
    %cst_11 = arith.constant 1.000000e-24 : f32
    %22 = vector.broadcast %cst_11 : f32 to vector<128x1xf32>
    %23 = arith.maximumf %21, %22 : vector<128x1xf32>
    %24 = math.rsqrt %23 : vector<128x1xf32>
    %25 = vector.broadcast %24 : vector<128x1xf32> to vector<128x128xf32>
    %26 = arith.mulf %18, %25 : vector<128x128xf32>
    %cst_12 = arith.constant 0.000000e+00 : f32
    %27 = vector.broadcast %cst_12 : f32 to vector<128x128xf32>
    %28 = arith.maximumf %26, %27 : vector<128x128xf32>
    %c0_13 = arith.constant 0 : index
    %c0_14 = arith.constant 0 : index
    %29 = vector.load %arg3[%c0_13, %c0_14] : memref<128x128xf32, #tpu.memory_space<vmem>>, vector<128x128xf32>
    tpu.vector_store %arg3[%c0_13, %c0_14], %28 {strides = array<i32>} : memref<128x128xf32, #tpu.memory_space<vmem>>, vector<128x128xf32>,
    return
  }
  func.func @transform_0(%arg0: i32) -> (i32, i32) {
    %c0_i32 = arith.constant 0 : i32
    %c0_i32_0 = arith.constant 0 : i32
    return %arg0, %c0_i32 : i32, i32
  }
  func.func @transform_1(%arg0: i32) -> (i32, i32) {
    %c0_i32 = arith.constant 0 : i32
    %c0_i32_0 = arith.constant 0 : i32
    return %arg0, %c0_i32 : i32, i32
  }
  func.func @transform_2(%arg0: i32) -> (i32, i32) {
    %c0_i32 = arith.constant 0 : i32
    %c0_i32_0 = arith.constant 0 : i32
    return %arg0, %c0_i32 : i32, i32
  }
}

</mosaic_0001>

<bundles_post_ra>
// kernel: tpu_custom_call.1
= control target key start
LH: loop header
LB: loop body
LE: loop exit
PB: predicated region body
PF: predicated region fallthrough
CT: control target
= control target key end

     0   :  { %7 = vsyncpa [#allocation3], 0  ;;  %s1463_s0 = inlined_call_operand.hbm [shape: f32[256,1024], index: 0, kind: input, shape index: {}]   ;;  %s1464_s1 = inlined_call_operand.hbm [shape: f32[256,128], index: 1, kind: input, shape index: {}]   ;;  %s1465_s2 = inlined_call_operand.hbm [shape: f32[256,128], index: 2, kind: output, shape index: {}]  }
   0x1   :  { %9 = vsyncpa [#allocation3 + $0x1], 0 }
   0x2   :  { %10 = vsyncpa [#allocation6], 0 }
   0x3   :  { %12 = vsyncpa [#allocation6 + $0x1], 0 }
   0x4   :  { %13 = vsyncpa [#allocation4], 0 }
   0x5   :  { %15 = vsyncpa [#allocation4 + $0x1], 0  ;;  %s1000_s9 = smov 0   ;;  %s1002_s10 = smov 0  }
   0x6   :  { %s1004_s11 = smov 0   ;;  %s1006_s12 = smov 0  }
   0x7 LB: > { %s1021_s13 = sadd.s32 4294967295, %s974_s12   ;;  %s732_s14 = sadd.s32 4294967294, %s974_s12   ;;  %s974_s12 = sphi %s1006_s12, %s1481_s12   ;;  %s970_s11 = sphi %s1004_s11, %s1480_s11   ;;  %s966_s10 = sphi %s1002_s10, %s1479_s10   ;;  %s962_s9 = sphi %s1000_s9, %s1478_s9  }
   0x8   : > { %s1025_s15 = sadd.s32 1, %s974_s12   ;;  %s28_s16 = sadd.s32 1, %s970_s11 }
   0x9   : > { %s25_s17 = ssub.s32 %s974_s12, %s1025_s15  ;;  %p35_p0 = scmp.ne.s32.totalorder %s970_s11, %s966_s10 }
   0xa   : > { %p26_p1 = scmp.eq.s32.totalorder %s25_s17, 0  ;;  %p36_p2 = scmp.eq.s32.totalorder %s974_s12, 0 }
   0xb   : > { %p41_p3 = scmp.ne.s32.totalorder %s966_s10, %s962_s9  ;;  %p42_p4 = scmp.eq.s32.totalorder %s1021_s13, 0 }
   0xc   : > { %s1037_s18 = scalar_select %p26_p1, %s970_s11, %s28_s16  }
   0xd   : > { %p1039_p5 = por %p36_p2, %p35_p0  ;;  %p1043_p6 = por %p42_p4, %p41_p3 }
   0xe   : > { %p91_p7 = scmp.eq.s32.totalorder %s1021_s13, 1  ;;  %p97_p8 = scmp.eq.s32.totalorder %s732_s14, 1 }
   0xf   : > { %s1469_s20 = scalar_select %p1043_p6, 1, 0 }
  0x10   : > { %p772_p10 = scmp.lt.s32.totalorder %s974_s12, 2  ;;  %p1050_p11 = por %p91_p7, %p35_p0 }
  0x11   : > { %p1054_p12 = por %p97_p8, %p41_p3  ;;  %s1059_s23 = sand.u32 1, %s970_s11  }
  0x12   : > { %s1470_s21 = scalar_select %p1050_p11, 1, 0 }
  0x13   : > { %s1471_s22 = scalar_select %p1054_p12, 1, 0 }
  0x14   : > { %s752_s24 = sshll.u32 %s974_s12, 14  ;;  %s735_s25 = sshll.u32 %s1059_s23, 10 }
  0x15   : > { %s1066_s28 = scalar_lea.hbm %s1463_s0, %s752_s24  ;;  %s121_s29 = scalar_lea.vmem [#allocation2], %s735_s25 }
  0x16   : > { %s129_s30 = sshll.u32 %s121_s29, 4  ;;  %p1070_p13 = pnand %p772_p10, %p1039_p5  ;;  %s1074_s30 = int_to_ptr.vmem [resolvable:$true] %s129_s30 }
  0x17   : > { %s118_s4 = scalar_lea.sflag [#allocation3], %s1059_s23  ;;  %s844_s5 = scalar_lea.hbm %s1066_s28, 16384 }
  0x18   : > { %p845_p0 = scmp.ne.s32.totalorder %s1066_s28, %s844_s5  ;;  %p846_p1 = pneg %p1070_p13 }
  0x19   : > { %s849_s8 = scalar_lea.hbm %s1463_s0, 32768  ;;  %p850_p4 = scmp.lt.u32.totalorder %s1066_s28, %s1463_s0 }
  0x1a   : > { %p847_p2 = pnand %p846_p1, %p845_p0  ;;  %p851_p5 = scmp.lt.u32.totalorder %s849_s8, %s844_s5 }
  0x1b   : > { %p853_p8 = scmp.lt.u32.totalorder %s844_s5, %s1066_s28 }
  0x1c   : > { %p848_p3 = pneg %p847_p2  ;;  %p852_p7 = por %p851_p5, %p850_p4 }
  0x1e   : > { %p854_p10 = por %p853_p8, %p852_p7 }
  0x20   : > { %p855_p9 = pnand %p854_p10, %p848_p3 }
  0x22   : > { %858 = shalt.err (!%p855_p9)
}
  0x23   : > { %s859_s17 = scalar_lea.vmem %s1074_s30, 16384  ;;  %s976_s19 = smov [#allocation2]  }
  0x24   : > { %p860_p0 = scmp.ne.s32.totalorder %s1074_s30, %s859_s17  ;;  %s864_s24 = sshll.u32 %s976_s19, 4  ;;  %s865_s24 = int_to_ptr.vmem [resolvable:$false] %s864_s24 }
  0x25   : > { %s866_s25 = scalar_lea.vmem %s865_s24, 32768  ;;  %p867_p11 = scmp.lt.s32.totalorder %s1074_s30, %s865_s24 }
  0x26   : > { %p862_p2 = pnand %p860_p0, %p846_p1  ;;  %p868_p4 = scmp.lt.s32.totalorder %s866_s25, %s859_s17 }
  0x28   : > { %p863_p12 = pneg %p862_p2  ;;  %p869_p5 = por %p868_p4, %p867_p11 }
  0x2a   : > { %p870_p7 = pnand %p869_p5, %p863_p12 }
  0x2c   : > { %873 = shalt.err (!%p870_p7)
}
  0x2d   : > { %s977_s26 = smov 1024   ;;  %s978_s27 = smov 64  }
  0x2e   : > { %764 = dma.hbm_to_vmem [thread:$0]  (!%p1070_p13), %s1066_s28, 16384, %s1074_s30, %s118_s4, %s977_s26, %s977_s26, %s978_s27  }
  0x2f   : > { %p742_p9 = scmp.ge.s32.totalorder %s974_s12, 1  ;;  %p158_p3 = scmp.lt.s32.totalorder %s974_s12, 3 }
  0x30   : > { %s739_s29 = sshll.u32 %s1059_s23, 7  ;;  %s753_s6 = sshll.u32 %s974_s12, 11 }
  0x31   : > { %p1107_p11 = pnand %p742_p9, %p158_p3  ;;  %s143_s7 = scalar_lea.vmem [#allocation5], %s739_s29 }
  0x32   : > { %s150_s8 = sshll.u32 %s143_s7, 4  ;;  %s1115_s17 = scalar_lea.hbm %s1464_s1, %s753_s6  ;;  %s1117_s8 = int_to_ptr.vmem [resolvable:$true] %s150_s8 }
  0x33   : > { %s140_s28 = scalar_lea.sflag [#allocation6], %s1059_s23  ;;  %s874_s30 = scalar_lea.hbm %s1115_s17, 2048 }
  0x34   : > { %p875_p12 = scmp.ne.s32.totalorder %s1115_s17, %s874_s30  ;;  %s879_s24 = scalar_lea.hbm %s1464_s1, 4096 }
  0x35   : > { %p880_p0 = scmp.lt.u32.totalorder %s1115_s17, %s1464_s1  ;;  %p881_p2 = scmp.lt.u32.totalorder %s879_s24, %s874_s30 }
  0x36   : > { %p877_p8 = pnand %p875_p12, %p846_p1  ;;  %p883_p5 = scmp.lt.u32.totalorder %s874_s30, %s1115_s17 }
  0x37   : > { %p882_p4 = por %p881_p2, %p880_p0 }
  0x38   : > { %p878_p10 = pneg %p877_p8 }
  0x39   : > { %p884_p7 = por %p883_p5, %p882_p4 }
  0x3b   : > { %p885_p9 = pnand %p884_p7, %p878_p10 }
  0x3d   : > { %888 = shalt.err (!%p885_p9)
}
  0x3e   : > { %s889_s27 = scalar_lea.vmem %s1117_s8, 2048  ;;  %s979_s29 = smov [#allocation5]  }
  0x3f   : > { %p890_p3 = scmp.ne.s32.totalorder %s1117_s8, %s889_s27  ;;  %s894_s6 = sshll.u32 %s979_s29, 4  ;;  %s895_s6 = int_to_ptr.vmem [resolvable:$false] %s894_s6 }
  0x40   : > { %s896_s7 = scalar_lea.vmem %s895_s6, 4096  ;;  %p897_p6 = scmp.lt.s32.totalorder %s1117_s8, %s895_s6 }
  0x41   : > { %p892_p12 = pnand %p890_p3, %p846_p1  ;;  %p898_p0 = scmp.lt.s32.totalorder %s896_s7, %s889_s27 }
  0x43   : > { %p893_p8 = pneg %p892_p12  ;;  %p899_p2 = por %p898_p0, %p897_p6 }
  0x45   : > { %p900_p4 = pnand %p899_p2, %p893_p8 }
  0x47   : > { %903 = shalt.err (!%p900_p4)
}
  0x48   : > { %s980_s14 = smov 128   ;;  %s981_s16 = smov 8  }
  0x49   : > { %767 = dma.hbm_to_vmem [thread:$0]  (!%p1070_p13), %s1115_s17, 2048, %s1117_s8, %s140_s28, %s980_s14, %s980_s14, %s981_s16  }
  0x4a   : > { %162 = sbr.rel (%p1107_p11) target bundleno = 322 (0x142), region = 28  ;;  %s1148_s30 = sand.u32 (!%p1107_p11), 1, %s966_s10  }
  0x4b   : > { %s743_s4 = sshll.u32 (!%p1107_p11), %s1148_s30, 10  ;;  %s165_s19 = scalar_lea.sflag (!%p1107_p11), [#allocation3], %s1148_s30 }
  0x4c   : > { %s1152_s24 = scalar_lea.vmem (!%p1107_p11), [#allocation2], %s743_s4  ;;  %p1474_p6 = scmp.ne.s32.totalorder (!%p1107_p11), %s1469_s20, 0 }
  0x51   : > { %949 = dma.done.wait (%p1474_p6), %s165_s19, 16384  }
  0x52   : > { %951 = vsyncadd (%p1474_p6), %s165_s19, 4294950912  ;;  %s744_s23 = sshll.u32 %s1148_s30, 7  ;;  %s174_s3 = scalar_lea.sflag [#allocation6], %s1148_s30 }
  0x53   : > { %s1162_s5 = scalar_lea.vmem [#allocation5], %s744_s23 }
  0x54   : > { %953 = dma.done.wait (%p1474_p6), %s174_s3, 2048  }
  0x55   : > { %955 = vsyncadd (%p1474_p6), %s174_s3, 4294965248  ;;  %v208_v0 = vld [vmem:[%s1152_s24 + $0x80] sm:$0xff]  ;;  %v224_v1 = vld [vmem:[%s1152_s24 + $0x88] sm:$0xff]  ;;  %s1380_s20 = scalar_lea.vmem [#allocation7], %s744_s23  ;;  %s754_s8 = sshll.u32 %s1021_s13, 11 }
  0x56   : > { %v256_v2 = vld [vmem:[%s1152_s24 + $0x90] sm:$0xff]  ;;  %v240_v3 = vadd.f32 %v224_v1, %v208_v0  ;;  %v288_v4 = vld [vmem:[%s1152_s24 + $0x98] sm:$0xff]  ;;  %v206_v6 = vld [vmem:[%s1152_s24] sm:$0xff]  ;;  %s636_s17 = sshll.u32 %s1380_s20, 4  ;;  %s1416_s26 = scalar_lea.hbm %s1465_s2, %s754_s8  ;;  %s1418_s17 = int_to_ptr.vmem [resolvable:$true] %s636_s17 }
  0x57   : > { %v222_v7 = vld [vmem:[%s1152_s24 + $0x8] sm:$0xff]  ;;  %v254_v8 = vld [vmem:[%s1152_s24 + $0x10] sm:$0xff]  ;;  %v320_v9 = vld [vmem:[%s1152_s24 + $0xa0] sm:$0xff]  ;;  %s623_s27 = scalar_lea.sflag [#allocation4], %s1148_s30  ;;  %s904_s13 = scalar_lea.vmem %s1418_s17, 2048 }
  0x58   : > { %v272_v5 = vadd.f32 %v256_v2, %v240_v3  ;;  %v238_v10 = vadd.f32 %v222_v7, %v206_v6  ;;  %v352_v12 = vld [vmem:[%s1152_s24 + $0xa8] sm:$0xff]  ;;  %v286_v13 = vld [vmem:[%s1152_s24 + $0x18] sm:$0xff]  ;;  %v209_v15 = vld [vmem:[%s1152_s24 + $0xc0] sm:$0xff]  ;;  %p905_p13 = scmp.ne.s32.totalorder %s1418_s17, %s904_s13  ;;  %p1475_p1 = scmp.ne.s32.totalorder %s1470_s21, 0 }
  0x59   : > { %v225_v16 = vld [vmem:[%s1152_s24 + $0xc8] sm:$0xff]  ;;  %v257_v17 = vld [vmem:[%s1152_s24 + $0xd0] sm:$0xff]  ;;  %v318_v19 = vld [vmem:[%s1152_s24 + $0x20] sm:$0xff]  ;;  %s982_s29 = smov [#allocation7]  }
  0x5a   : > { %v304_v11 = vadd.f32 %v288_v4, %v272_v5  ;;  %v270_v14 = vadd.f32 %v254_v8, %v238_v10  ;;  %v241_v20 = vadd.f32 %v225_v16, %v209_v15  ;;  %v384_v21 = vld [vmem:[%s1152_s24 + $0xb0] sm:$0xff]  ;;  %v350_v23 = vld [vmem:[%s1152_s24 + $0x28] sm:$0xff]  ;;  %v289_v24 = vld [vmem:[%s1152_s24 + $0xd8] sm:$0xff]  ;;  %p906_p11 = pnand %p905_p13, %p1475_p1  ;;  %s908_s6 = sshll.u32 %s982_s29, 4  ;;  %s909_s6 = int_to_ptr.vmem [resolvable:$false] %s908_s6 }
  0x5b   : > { %v207_v27 = vld [vmem:[%s1152_s24 + $0x40] sm:$0xff]  ;;  %v223_v28 = vld [vmem:[%s1152_s24 + $0x48] sm:$0xff]  ;;  %v255_v29 = vld [vmem:[%s1152_s24 + $0x50] sm:$0xff]  ;;  %s910_s7 = scalar_lea.vmem %s909_s6, 4096  ;;  %p911_p5 = scmp.lt.s32.totalorder %s1418_s17, %s909_s6 }
  0x5c   : > { %v336_v18 = vadd.f32 %v320_v9, %v304_v11  ;;  %v302_v22 = vadd.f32 %v286_v13, %v270_v14  ;;  %v273_v26 = vadd.f32 %v257_v17, %v241_v20  ;;  %v416_v30 = vld [vmem:[%s1152_s24 + $0xb8] sm:$0xff]  ;;  %v321_v32 = vld [vmem:[%s1152_s24 + $0xe0] sm:$0xff]  ;;  %v239_v33 = vadd.f32 %v223_v28, %v207_v27  ;;  %v382_v35 = vld [vmem:[%s1152_s24 + $0x30] sm:$0xff]  ;;  %p907_p10 = pneg %p906_p11  ;;  %p912_p7 = scmp.lt.s32.totalorder %s910_s7, %s904_s13 }
  0x5d   : > { %v353_v37 = vld [vmem:[%s1152_s24 + $0xe8] sm:$0xff]  ;;  %v287_v38 = vld [vmem:[%s1152_s24 + $0x58] sm:$0xff]  ;;  %v211_v41 = vld [vmem:[%s1152_s24 + $0x140] sm:$0xff] }
  0x5e   : > { %v368_v25 = vadd.f32 %v352_v12, %v336_v18  ;;  %v334_v31 = vadd.f32 %v318_v19, %v302_v22  ;;  %v305_v36 = vadd.f32 %v289_v24, %v273_v26  ;;  %v271_v40 = vadd.f32 %v255_v29, %v239_v33  ;;  %v227_v42 = vld [vmem:[%s1152_s24 + $0x148] sm:$0xff]  ;;  %v259_v43 = vld [vmem:[%s1152_s24 + $0x150] sm:$0xff]  ;;  %v414_v46 = vld [vmem:[%s1152_s24 + $0x38] sm:$0xff]  ;;  %p913_p9 = por %p912_p7, %p911_p5 }
  0x5f   : > { %v464_v45 = vld [vmem:[%s1162_s5 + $0x10] sm:$0xff]  ;;  %v319_v48 = vld [vmem:[%s1152_s24 + $0x60] sm:$0xff]  ;;  %v243_v49 = vadd.f32 %v227_v42, %v211_v41  ;;  %v351_v53 = vld [vmem:[%s1152_s24 + $0x68] sm:$0xff] }
  0x60   : > { %v400_v34 = vadd.f32 %v384_v21, %v368_v25  ;;  %v366_v39 = vadd.f32 %v350_v23, %v334_v31  ;;  %v337_v47 = vadd.f32 %v321_v32, %v305_v36  ;;  %v385_v51 = vld [vmem:[%s1152_s24 + $0xf0] sm:$0xff]  ;;  %v303_v52 = vadd.f32 %v287_v38, %v271_v40  ;;  %v291_v54 = vld [vmem:[%s1152_s24 + $0x158] sm:$0xff]  ;;  %v210_v58 = vld [vmem:[%s1152_s24 + $0x100] sm:$0xff]  ;;  %p914_p3 = pnand %p913_p9, %p907_p10 }
  0x61   : > { %v275_v57 = vadd.f32 %v259_v43, %v243_v49  ;;  %v226_v59 = vld [vmem:[%s1152_s24 + $0x108] sm:$0xff]  ;;  %v258_v60 = vld [vmem:[%s1152_s24 + $0x110] sm:$0xff]  ;;  %v462_v62 = vld [vmem:[%s1162_s5] sm:$0xff] }
  0x62   : > { %v432_v44 = vadd.f32 %v416_v30, %v400_v34  ;;  %v398_v50 = vadd.f32 %v382_v35, %v366_v39  ;;  %v369_v56 = vadd.f32 %v353_v37, %v337_v47  ;;  %v417_v63 = vld [vmem:[%s1152_s24 + $0xf8] sm:$0xff]  ;;  %v335_v0 = vadd.f32 %v319_v48, %v303_v52  ;;  %v323_v1 = vld [vmem:[%s1152_s24 + $0x160] sm:$0xff]  ;;  %v383_v5 = vld [vmem:[%s1152_s24 + $0x70] sm:$0xff] }
  0x63   : > { %v242_v2 = vadd.f32 %v226_v59, %v210_v58  ;;  %v307_v6 = vadd.f32 %v291_v54, %v275_v57  ;;  %v355_v7 = vld [vmem:[%s1152_s24 + $0x168] sm:$0xff]  ;;  %v290_v8 = vld [vmem:[%s1152_s24 + $0x118] sm:$0xff]  ;;  %v213_v12 = vld [vmem:[%s1152_s24 + $0x1c0] sm:$0xff] }
  0x64   : > { %v448_v55 = vmul.f32 0.125, %v432_v44  ;;  %v430_v61 = vadd.f32 %v414_v46, %v398_v50  ;;  %v401_v4 = vadd.f32 %v385_v51, %v369_v56  ;;  %v367_v10 = vadd.f32 %v351_v53, %v335_v0  ;;  %v229_v13 = vld [vmem:[%s1152_s24 + $0x1c8] sm:$0xff]  ;;  %v261_v14 = vld [vmem:[%s1152_s24 + $0x1d0] sm:$0xff]  ;;  %v465_v17 = vld [vmem:[%s1162_s5 + $0x18] sm:$0xff] }
  0x65   : > { %v274_v11 = vadd.f32 %v258_v60, %v242_v2  ;;  %v415_v18 = vld [vmem:[%s1152_s24 + $0x78] sm:$0xff]  ;;  %v339_v19 = vadd.f32 %v323_v1, %v307_v6  ;;  %v322_v20 = vld [vmem:[%s1152_s24 + $0x120] sm:$0xff]  ;;  %v245_v21 = vadd.f32 %v229_v13, %v213_v12  ;;  %v387_v24 = vld [vmem:[%s1152_s24 + $0x170] sm:$0xff] }
  0x66   : > { %v1208_v3 = vadd.f32 %v464_v45, %v448_v55  ;;  %v446_v9 = vmul.f32 0.125, %v430_v61  ;;  %v433_v16 = vadd.f32 %v417_v63, %v401_v4  ;;  %v399_v23 = vadd.f32 %v383_v5, %v367_v10  ;;  %v354_v26 = vld [vmem:[%s1152_s24 + $0x128] sm:$0xff]  ;;  %v293_v27 = vld [vmem:[%s1152_s24 + $0x1d8] sm:$0xff]  ;;  %v212_v31 = vld [vmem:[%s1152_s24 + $0x180] sm:$0xff] }
  0x67   : > { %v306_v25 = vadd.f32 %v290_v8, %v274_v11  ;;  %v371_v29 = vadd.f32 %v355_v7, %v339_v19  ;;  %v277_v30 = vadd.f32 %v261_v14, %v245_v21  ;;  %v228_v32 = vld [vmem:[%s1152_s24 + $0x188] sm:$0xff]  ;;  %v260_v33 = vld [vmem:[%s1152_s24 + $0x190] sm:$0xff]  ;;  %v419_v37 = vld [vmem:[%s1152_s24 + $0x178] sm:$0xff] }
  0x68   : > { %v496_v15 = vmul.f32 %v1208_v3, %v1208_v3  ;;  %v1221_v22 = vadd.f32 %v462_v62, %v446_v9  ;;  %v449_v28 = vmul.f32 0.125, %v433_v16  ;;  %v431_v35 = vadd.f32 %v415_v18, %v399_v23  ;;  %v463_v36 = vld [vmem:[%s1162_s5 + $0x8] sm:$0xff]  ;;  %v325_v39 = vld [vmem:[%s1152_s24 + $0x1e0] sm:$0xff]  ;;  %v386_v43 = vld [vmem:[%s1152_s24 + $0x130] sm:$0xff] }
  0x69   : > { %v338_v38 = vadd.f32 %v322_v20, %v306_v25  ;;  %v244_v40 = vadd.f32 %v228_v32, %v212_v31  ;;  %v403_v42 = vadd.f32 %v387_v24, %v371_v29  ;;  %v309_v44 = vadd.f32 %v293_v27, %v277_v30  ;;  %v357_v45 = vld [vmem:[%s1152_s24 + $0x1e8] sm:$0xff]  ;;  %v292_v46 = vld [vmem:[%s1152_s24 + $0x198] sm:$0xff]  ;;  %v215_v50 = vld [vmem:[%s1152_s24 + $0x240] sm:$0xff] }
  0x6a   : > { %514 = vadd.xlane.f32.xlu1 %v496_v15  ;;  %v494_v34 = vmul.f32 %v1221_v22, %v1221_v22  ;;  %v1234_v41 = vadd.f32 %v465_v17, %v449_v28  ;;  %v447_v47 = vmul.f32 0.125, %v431_v35  ;;  %v231_v51 = vld [vmem:[%s1152_s24 + $0x248] sm:$0xff]  ;;  %v263_v52 = vld [vmem:[%s1152_s24 + $0x250] sm:$0xff]  ;;  %v418_v56 = vld [vmem:[%s1152_s24 + $0x138] sm:$0xff] }
  0x6b   : > { %v370_v48 = vadd.f32 %v354_v26, %v338_v38  ;;  %v276_v49 = vadd.f32 %v260_v33, %v244_v40  ;;  %v435_v54 = vadd.f32 %v419_v37, %v403_v42  ;;  %v467_v55 = vld [vmem:[%s1162_s5 + $0x28] sm:$0xff]  ;;  %v341_v57 = vadd.f32 %v325_v39, %v309_v44  ;;  %v324_v58 = vld [vmem:[%s1152_s24 + $0x1a0] sm:$0xff]  ;;  %v389_v62 = vld [vmem:[%s1152_s24 + $0x1f0] sm:$0xff] }
  0x6c   : > { %510 = vadd.xlane.f32.xlu0 %v494_v34  ;;  %v497_v53 = vmul.f32 %v1234_v41, %v1234_v41  ;;  %v247_v59 = vadd.f32 %v231_v51, %v215_v50  ;;  %v1247_v60 = vadd.f32 %v463_v36, %v447_v47  ;;  %v356_v0 = vld [vmem:[%s1152_s24 + $0x1a8] sm:$0xff]  ;;  %v295_v1 = vld [vmem:[%s1152_s24 + $0x258] sm:$0xff]  ;;  %v214_v6 = vld [vmem:[%s1152_s24 + $0x200] sm:$0xff] }
  0x6d   : > { %v402_v61 = vadd.f32 %v386_v43, %v370_v48  ;;  %v308_v63 = vadd.f32 %v292_v46, %v276_v49  ;;  %v451_v2 = vmul.f32 0.125, %v435_v54  ;;  %v373_v4 = vadd.f32 %v357_v45, %v341_v57  ;;  %v230_v7 = vld [vmem:[%s1152_s24 + $0x208] sm:$0xff]  ;;  %v262_v8 = vld [vmem:[%s1152_s24 + $0x210] sm:$0xff]  ;;  %v466_v11 = vld [vmem:[%s1162_s5 + $0x20] sm:$0xff] }
  0x6e   : > { %516 = vadd.xlane.f32.xlu1 %v497_v53  ;;  %v279_v5 = vadd.f32 %v263_v52, %v247_v59  ;;  %v495_v9 = vmul.f32 %v1247_v60, %v1247_v60  ;;  %v421_v12 = vld [vmem:[%s1152_s24 + $0x1f8] sm:$0xff]  ;;  %v327_v14 = vld [vmem:[%s1152_s24 + $0x260] sm:$0xff]  ;;  %v246_v15 = vadd.f32 %v230_v7, %v214_v6  ;;  %v388_v18 = vld [vmem:[%s1152_s24 + $0x1b0] sm:$0xff] }
  0x6f   : > { %v434_v10 = vadd.f32 %v418_v56, %v402_v61  ;;  %v340_v13 = vadd.f32 %v324_v58, %v308_v63  ;;  %v1260_v16 = vadd.f32 %v467_v55, %v451_v2  ;;  %v405_v17 = vadd.f32 %v389_v62, %v373_v4  ;;  %v359_v20 = vld [vmem:[%s1152_s24 + $0x268] sm:$0xff]  ;;  %v294_v21 = vld [vmem:[%s1152_s24 + $0x218] sm:$0xff]  ;;  %v217_v26 = vld [vmem:[%s1152_s24 + $0x2c0] sm:$0xff] }
  0x70   : > { %v311_v19 = vadd.f32 %v295_v1, %v279_v5  ;;  %512 = vadd.xlane.f32.xlu0 %v495_v9  ;;  %v278_v25 = vadd.f32 %v262_v8, %v246_v15  ;;  %v233_v27 = vld [vmem:[%s1152_s24 + $0x2c8] sm:$0xff]  ;;  %v265_v28 = vld [vmem:[%s1152_s24 + $0x2d0] sm:$0xff]  ;;  %v469_v31 = vld [vmem:[%s1162_s5 + $0x38] sm:$0xff] }
  0x71   : > { %v450_v23 = vmul.f32 0.125, %v434_v10  ;;  %v372_v24 = vadd.f32 %v356_v0, %v340_v13  ;;  %v499_v29 = vmul.f32 %v1260_v16, %v1260_v16  ;;  %v437_v30 = vadd.f32 %v421_v12, %v405_v17  ;;  %v420_v32 = vld [vmem:[%s1152_s24 + $0x1b8] sm:$0xff]  ;;  %v326_v34 = vld [vmem:[%s1152_s24 + $0x220] sm:$0xff]  ;;  %v391_v38 = vld [vmem:[%s1152_s24 + $0x270] sm:$0xff] }
  0x72   : > { %v343_v33 = vadd.f32 %v327_v14, %v311_v19  ;;  %v249_v35 = vadd.f32 %v233_v27, %v217_v26  ;;  %v310_v39 = vadd.f32 %v294_v21, %v278_v25  ;;  %v358_v40 = vld [vmem:[%s1152_s24 + $0x228] sm:$0xff]  ;;  %v297_v42 = vld [vmem:[%s1152_s24 + $0x2d8] sm:$0xff]  ;;  %v216_v46 = vld [vmem:[%s1152_s24 + $0x280] sm:$0xff] }
  0x73   : > { %v1273_v36 = vadd.f32 %v466_v11, %v450_v23  ;;  %v404_v37 = vadd.f32 %v388_v18, %v372_v24  ;;  %520 = vadd.xlane.f32.xlu1 %v499_v29  ;;  %v453_v43 = vmul.f32 0.125, %v437_v30  ;;  %v232_v47 = vld [vmem:[%s1152_s24 + $0x288] sm:$0xff]  ;;  %v264_v48 = vld [vmem:[%s1152_s24 + $0x290] sm:$0xff]  ;;  %v423_v52 = vld [vmem:[%s1152_s24 + $0x278] sm:$0xff] }
  0x74   : > { %v375_v44 = vadd.f32 %v359_v20, %v343_v33  ;;  %v281_v45 = vadd.f32 %v265_v28, %v249_v35  ;;  %v468_v51 = vld [vmem:[%s1162_s5 + $0x30] sm:$0xff]  ;;  %v342_v53 = vadd.f32 %v326_v34, %v310_v39  ;;  %v329_v54 = vld [vmem:[%s1152_s24 + $0x2e0] sm:$0xff]  ;;  %v248_v55 = vadd.f32 %v232_v47, %v216_v46  ;;  %v361_v61 = vld [vmem:[%s1152_s24 + $0x2e8] sm:$0xff] }
  0x75   : > { %v498_v49 = vmul.f32 %v1273_v36, %v1273_v36  ;;  %v436_v50 = vadd.f32 %v420_v32, %v404_v37  ;;  %v1286_v56 = vadd.f32 %v469_v31, %v453_v43  ;;  %v390_v58 = vld [vmem:[%s1152_s24 + $0x230] sm:$0xff]  ;;  %v296_v62 = vld [vmem:[%s1152_s24 + $0x298] sm:$0xff]  ;;  %v219_v2 = vld [vmem:[%s1152_s24 + $0x340] sm:$0xff] }
  0x76   : > { %v407_v57 = vadd.f32 %v391_v38, %v375_v44  ;;  %v313_v59 = vadd.f32 %v297_v42, %v281_v45  ;;  %v374_v0 = vadd.f32 %v358_v40, %v342_v53  ;;  %v280_v1 = vadd.f32 %v264_v48, %v248_v55  ;;  %v235_v4 = vld [vmem:[%s1152_s24 + $0x348] sm:$0xff]  ;;  %v267_v5 = vld [vmem:[%s1152_s24 + $0x350] sm:$0xff]  ;;  %v422_v9 = vld [vmem:[%s1152_s24 + $0x238] sm:$0xff] }
  0x77   : > { %518 = vadd.xlane.f32.xlu0 %v498_v49  ;;  %v452_v63 = vmul.f32 0.125, %v436_v50  ;;  %v501_v6 = vmul.f32 %v1286_v56, %v1286_v56  ;;  %v471_v8 = vld [vmem:[%s1162_s5 + $0x48] sm:$0xff]  ;;  %v328_v11 = vld [vmem:[%s1152_s24 + $0x2a0] sm:$0xff]  ;;  %v251_v12 = vadd.f32 %v235_v4, %v219_v2  ;;  %v393_v15 = vld [vmem:[%s1152_s24 + $0x2f0] sm:$0xff] }
  0x78   : > { %v439_v7 = vadd.f32 %v423_v52, %v407_v57  ;;  %v345_v10 = vadd.f32 %v329_v54, %v313_v59  ;;  %v406_v14 = vadd.f32 %v390_v58, %v374_v0  ;;  %v312_v17 = vadd.f32 %v296_v62, %v280_v1  ;;  %v360_v18 = vld [vmem:[%s1152_s24 + $0x2a8] sm:$0xff]  ;;  %v299_v19 = vld [vmem:[%s1152_s24 + $0x358] sm:$0xff]  ;;  %v218_v24 = vld [vmem:[%s1152_s24 + $0x300] sm:$0xff] }
  0x79   : > { %v1299_v13 = vadd.f32 %v468_v51, %v452_v63  ;;  %524 = vadd.xlane.f32.xlu1 %v501_v6  ;;  %v283_v23 = vadd.f32 %v267_v5, %v251_v12  ;;  %v234_v25 = vld [vmem:[%s1152_s24 + $0x308] sm:$0xff]  ;;  %v266_v26 = vld [vmem:[%s1152_s24 + $0x310] sm:$0xff]  ;;  %v470_v29 = vld [vmem:[%s1162_s5 + $0x40] sm:$0xff] }
  0x7a   : > { %v455_v20 = vmul.f32 0.125, %v439_v7  ;;  %v377_v21 = vadd.f32 %v361_v61, %v345_v10  ;;  %v438_v28 = vadd.f32 %v422_v9, %v406_v14  ;;  %v425_v30 = vld [vmem:[%s1152_s24 + $0x2f8] sm:$0xff]  ;;  %v344_v31 = vadd.f32 %v328_v11, %v312_v17  ;;  %v331_v32 = vld [vmem:[%s1152_s24 + $0x360] sm:$0xff]  ;;  %v392_v37 = vld [vmem:[%s1152_s24 + $0x2b0] sm:$0xff] }
  0x7b   : > { %v500_v27 = vmul.f32 %v1299_v13, %v1299_v13  ;;  %v250_v33 = vadd.f32 %v234_v25, %v218_v24  ;;  %v315_v38 = vadd.f32 %v299_v19, %v283_v23  ;;  %v363_v39 = vld [vmem:[%s1152_s24 + $0x368] sm:$0xff]  ;;  %v298_v40 = vld [vmem:[%s1152_s24 + $0x318] sm:$0xff]  ;;  %v221_v45 = vld [vmem:[%s1152_s24 + $0x3c0] sm:$0xff] }
  0x7c   : > { %v1312_v34 = vadd.f32 %v471_v8, %v455_v20  ;;  %v409_v35 = vadd.f32 %v393_v15, %v377_v21  ;;  %v454_v42 = vmul.f32 0.125, %v438_v28  ;;  %v376_v43 = vadd.f32 %v360_v18, %v344_v31  ;;  %v237_v46 = vld [vmem:[%s1152_s24 + $0x3c8] sm:$0xff]  ;;  %v269_v47 = vld [vmem:[%s1152_s24 + $0x3d0] sm:$0xff]  ;;  %v473_v50 = vld [vmem:[%s1162_s5 + $0x58] sm:$0xff] }
  0x7d   : > { %522 = vadd.xlane.f32.xlu0 %v500_v27  ;;  %v282_v44 = vadd.f32 %v266_v26, %v250_v33  ;;  %v424_v51 = vld [vmem:[%s1152_s24 + $0x2b8] sm:$0xff]  ;;  %v347_v52 = vadd.f32 %v331_v32, %v315_v38  ;;  %v330_v53 = vld [vmem:[%s1152_s24 + $0x320] sm:$0xff]  ;;  %v253_v54 = vadd.f32 %v237_v46, %v221_v45  ;;  %v395_v58 = vld [vmem:[%s1152_s24 + $0x370] sm:$0xff] }
  0x7e   : > { %v503_v48 = vmul.f32 %v1312_v34, %v1312_v34  ;;  %v441_v49 = vadd.f32 %v425_v30, %v409_v35  ;;  %v1325_v55 = vadd.f32 %v470_v29, %v454_v42  ;;  %v408_v57 = vadd.f32 %v392_v37, %v376_v43  ;;  %v362_v61 = vld [vmem:[%s1152_s24 + $0x328] sm:$0xff]  ;;  %v301_v62 = vld [vmem:[%s1152_s24 + $0x3d8] sm:$0xff]  ;;  %v220_v2 = vld [vmem:[%s1152_s24 + $0x380] sm:$0xff] }
  0x7f   : > { %v314_v59 = vadd.f32 %v298_v40, %v282_v44  ;;  %v379_v0 = vadd.f32 %v363_v39, %v347_v52  ;;  %v285_v1 = vadd.f32 %v269_v47, %v253_v54  ;;  %v236_v4 = vld [vmem:[%s1152_s24 + $0x388] sm:$0xff]  ;;  %v268_v5 = vld [vmem:[%s1152_s24 + $0x390] sm:$0xff]  ;;  %v427_v8 = vld [vmem:[%s1152_s24 + $0x378] sm:$0xff] }
  0x80   : > { %528 = vadd.xlane.f32.xlu1 %v503_v48  ;;  %v457_v63 = vmul.f32 0.125, %v441_v49  ;;  %v502_v6 = vmul.f32 %v1325_v55, %v1325_v55  ;;  %v440_v7 = vadd.f32 %v424_v51, %v408_v57  ;;  %v333_v10 = vld [vmem:[%s1152_s24 + $0x3e0] sm:$0xff]  ;;  %v252_v11 = vadd.f32 %v236_v4, %v220_v2  ;;  %v472_v14 = vld [vmem:[%s1162_s5 + $0x50] sm:$0xff]  ;;  %v300_v19 = vld [vmem:[%s1152_s24 + $0x398] sm:$0xff] }
  0x81   : > { %v346_v9 = vadd.f32 %v330_v53, %v314_v59  ;;  %v411_v15 = vadd.f32 %v395_v58, %v379_v0  ;;  %v394_v17 = vld [vmem:[%s1152_s24 + $0x330] sm:$0xff]  ;;  %v317_v18 = vadd.f32 %v301_v62, %v285_v1  ;;  %v365_v23 = vld [vmem:[%s1152_s24 + $0x3e8] sm:$0xff]  ;;  %v426_v27 = vld [vmem:[%s1152_s24 + $0x338] sm:$0xff] }
  0x82   : > { %v1337_v12 = vadd.f32 %v473_v50, %v457_v63  ;;  %526 = vadd.xlane.f32.xlu0 %v502_v6  ;;  %v456_v20 = vmul.f32 0.125, %v440_v7  ;;  %v284_v24 = vadd.f32 %v268_v5, %v252_v11  ;;  %v332_v29 = vld [vmem:[%s1152_s24 + $0x3a0] sm:$0xff]  ;;  %v475_v31 = vld [vmem:[%s1162_s5 + $0x68] sm:$0xff]  ;;  %v397_v33 = vld [vmem:[%s1152_s24 + $0x3f0] sm:$0xff] }
  0x83   : > { %v378_v21 = vadd.f32 %v362_v61, %v346_v9  ;;  %v443_v26 = vadd.f32 %v427_v8, %v411_v15  ;;  %v349_v28 = vadd.f32 %v333_v10, %v317_v18  ;;  %v364_v39 = vld [vmem:[%s1152_s24 + $0x3a8] sm:$0xff]  ;;  %v429_v43 = vld [vmem:[%s1152_s24 + $0x3f8] sm:$0xff]  ;;  %v474_v46 = vld [vmem:[%s1162_s5 + $0x60] sm:$0xff] }
  0x84   : > { %v505_v25 = vmul.f32 %v1337_v12, %v1337_v12  ;;  %v1347_v30 = vadd.f32 %v472_v14, %v456_v20  ;;  %v316_v35 = vadd.f32 %v300_v19, %v284_v24  ;;  %v396_v48 = vld [vmem:[%s1152_s24 + $0x3b0] sm:$0xff]  ;;  %v428_v53 = vld [vmem:[%s1152_s24 + $0x3b8] sm:$0xff] }
  0x85   : > { %v410_v32 = vadd.f32 %v394_v17, %v378_v21  ;;  %v459_v37 = vmul.f32 0.125, %v443_v26  ;;  %v381_v38 = vadd.f32 %v365_v23, %v349_v28  ;;  %v477_v57 = vld [vmem:[%s1162_s5 + $0x78] sm:$0xff]  ;;  %v476_v0 = vld [vmem:[%s1162_s5 + $0x70] sm:$0xff] }
  0x86   : > { %532 = vadd.xlane.f32.xlu1 %v505_v25  ;;  %v504_v40 = vmul.f32 %v1347_v30, %v1347_v30  ;;  %v348_v44 = vadd.f32 %v332_v29, %v316_v35 }
  0x87   : > { %v442_v42 = vadd.f32 %v426_v27, %v410_v32  ;;  %v1355_v45 = vadd.f32 %v475_v31, %v459_v37  ;;  %v413_v47 = vadd.f32 %v397_v33, %v381_v38 }
  0x88   : > { %530 = vadd.xlane.f32.xlu0 %v504_v40  ;;  %v380_v50 = vadd.f32 %v364_v39, %v348_v44 }
  0x89   : > { %v458_v49 = vmul.f32 0.125, %v442_v42  ;;  %v507_v51 = vmul.f32 %v1355_v45, %v1355_v45  ;;  %v445_v52 = vadd.f32 %v429_v43, %v413_v47 }
  0x8a   : > { %v412_v58 = vadd.f32 %v396_v48, %v380_v50 }
  0x8b   : > { %v1362_v54 = vadd.f32 %v474_v46, %v458_v49  ;;  %536 = vadd.xlane.f32.xlu1 %v507_v51  ;;  %v461_v59 = vmul.f32 0.125, %v445_v52 }
  0x8c   : > { %v444_v62 = vadd.f32 %v428_v53, %v412_v58 }
  0x8d   : > { %v506_v61 = vmul.f32 %v1362_v54, %v1362_v54  ;;  %v1367_v63 = vadd.f32 %v477_v57, %v461_v59 }
  0x8e   : > { %v460_v1 = vmul.f32 0.125, %v444_v62 }
  0x8f   : > { %534 = vadd.xlane.f32.xlu0 %v506_v61  ;;  %v509_v2 = vmul.f32 %v1367_v63, %v1367_v63 }
  0x90   : > { %v1372_v4 = vadd.f32 %v476_v0, %v460_v1 }
  0x91   : > { %540 = vadd.xlane.f32.xlu1 %v509_v2 }
  0x92   : > { %v508_v5 = vmul.f32 %v1372_v4, %v1372_v4 }
  0x94   : > { %538 = vadd.xlane.f32.xlu0 %v508_v5 }
  0xf7   : > { %v515_v6 = vpop.xlane.xlu1 %514 }
  0xf8   : > { %v544_v7 = vmax.f32 %v515_v6, 1e-24 }
  0xf9   : > { %v511_v8 = vpop.xlane.xlu0 %510 }
  0xfa   : > { %812 = vrsqrt.f32 %v544_v7  ;;  %v542_v9 = vmax.f32 %v511_v8, 1e-24 }
  0xfb   : > { %v517_v10 = vpop.xlane.xlu1 %516 }
  0xfc   : > { %814 = vrsqrt.f32 %v542_v9  ;;  %v545_v11 = vmax.f32 %v517_v10, 1e-24 }
  0xfd   : > { %v513_v14 = vpop.xlane.xlu0 %512 }
  0xfe   : > { %816 = vrsqrt.f32 %v545_v11  ;;  %v543_v15 = vmax.f32 %v513_v14, 1e-24 }
 0x100   : > { %818 = vrsqrt.f32 %v543_v15  ;;  %v521_v17 = vpop.xlane.xlu1 %520 }
 0x101   : > { %v547_v19 = vmax.f32 %v521_v17, 1e-24 }
 0x103   : > { %820 = vrsqrt.f32 %v547_v19 }
 0x104   : > { %v813_v18 = vpop.eup %812  ;;  %v519_v21 = vpop.xlane.xlu0 %518 }
 0x105   : > { %v576_v20 = vmul.f32 %v813_v18, %v1208_v3  ;;  %v546_v25 = vmax.f32 %v519_v21, 1e-24 }
 0x106   : > { %v815_v23 = vpop.eup %814  ;;  %v525_v27 = vpop.xlane.xlu1 %524 }
 0x107   : > { %v592_v24 = vmax.f32 %v576_v20, 0.0  ;;  %v574_v26 = vmul.f32 %v815_v23, %v1221_v22  ;;  %822 = vrsqrt.f32 %v546_v25  ;;  %v549_v31 = vmax.f32 %v525_v27, 1e-24 }
 0x108   : > { %v817_v28 = vpop.eup %816 }
 0x109   : > { %608 = vst [vmem:[%s1380_s20 + $0x10] sm:$0xff] %v592_v24  ;;  %v590_v29 = vmax.f32 %v574_v26, 0.0  ;;  %v577_v3 = vmul.f32 %v817_v28, %v1234_v41  ;;  %824 = vrsqrt.f32 %v549_v31 }
 0x10a   : > { %v523_v32 = vpop.xlane.xlu0 %522  ;;  %v819_v33 = vpop.eup %818 }
 0x10b   : > { %606 = vst [vmem:[%s1380_s20] sm:$0xff] %v590_v29  ;;  %v593_v22 = vmax.f32 %v577_v3, 0.0  ;;  %v548_v35 = vmax.f32 %v523_v32, 1e-24  ;;  %v575_v37 = vmul.f32 %v819_v33, %v1247_v60 }
 0x10d   : > { %609 = vst [vmem:[%s1380_s20 + $0x18] sm:$0xff] %v593_v22  ;;  %826 = vrsqrt.f32 %v548_v35  ;;  %v529_v38 = vpop.xlane.xlu1 %528  ;;  %v821_v39 = vpop.eup %820  ;;  %v591_v40 = vmax.f32 %v575_v37, 0.0 }
 0x10e   : > { %v551_v42 = vmax.f32 %v529_v38, 1e-24  ;;  %v579_v43 = vmul.f32 %v821_v39, %v1260_v16 }
 0x10f   : > { %607 = vst [vmem:[%s1380_s20 + $0x8] sm:$0xff] %v591_v40  ;;  %v527_v41 = vpop.xlane.xlu0 %526 }
 0x110   : > { %828 = vrsqrt.f32 %v551_v42  ;;  %v595_v46 = vmax.f32 %v579_v43, 0.0  ;;  %v550_v47 = vmax.f32 %v527_v41, 1e-24 }
 0x111   : > { %v823_v44 = vpop.eup %822 }
 0x112   : > { %v578_v48 = vmul.f32 %v823_v44, %v1273_v36  ;;  %611 = vst [vmem:[%s1380_s20 + $0x28] sm:$0xff] %v595_v46  ;;  %830 = vrsqrt.f32 %v550_v47 }
 0x113   : > { %v533_v60 = vpop.xlane.xlu1 %532  ;;  %v825_v49 = vpop.eup %824 }
 0x114   : > { %v594_v50 = vmax.f32 %v578_v48, 0.0  ;;  %v553_v51 = vmax.f32 %v533_v60, 1e-24  ;;  %v581_v52 = vmul.f32 %v825_v49, %v1286_v56 }
 0x115   : > { %v531_v16 = vpop.xlane.xlu0 %530 }
 0x116   : > { %610 = vst [vmem:[%s1380_s20 + $0x20] sm:$0xff] %v594_v50  ;;  %832 = vrsqrt.f32 %v553_v51  ;;  %v597_v57 = vmax.f32 %v581_v52, 0.0  ;;  %v552_v58 = vmax.f32 %v531_v16, 1e-24 }
 0x117   : > { %v827_v53 = vpop.eup %826 }
 0x118   : > { %v580_v59 = vmul.f32 %v827_v53, %v1299_v13  ;;  %613 = vst [vmem:[%s1380_s20 + $0x38] sm:$0xff] %v597_v57  ;;  %834 = vrsqrt.f32 %v552_v58  ;;  %v537_v36 = vpop.xlane.xlu1 %536 }
 0x119   : > { %v555_v0 = vmax.f32 %v537_v36, 1e-24 }
 0x11a   : > { %v829_v61 = vpop.eup %828  ;;  %v596_v62 = vmax.f32 %v580_v59, 0.0 }
 0x11b   : > { %v583_v1 = vmul.f32 %v829_v61, %v1312_v34  ;;  %836 = vrsqrt.f32 %v555_v0 }
 0x11c   : > { %612 = vst [vmem:[%s1380_s20 + $0x30] sm:$0xff] %v596_v62  ;;  %v535_v56 = vpop.xlane.xlu0 %534  ;;  %v831_v2 = vpop.eup %830 }
 0x11d   : > { %v599_v5 = vmax.f32 %v583_v1, 0.0  ;;  %v554_v6 = vmax.f32 %v535_v56, 1e-24  ;;  %v582_v7 = vmul.f32 %v831_v2, %v1325_v55 }
 0x11e   : > { %v541_v13 = vpop.xlane.xlu1 %540 }
 0x11f   : > { %615 = vst [vmem:[%s1380_s20 + $0x48] sm:$0xff] %v599_v5  ;;  %838 = vrsqrt.f32 %v554_v6  ;;  %v598_v9 = vmax.f32 %v582_v7, 0.0  ;;  %v557_v10 = vmax.f32 %v541_v13, 1e-24 }
 0x120   : > { %v833_v8 = vpop.eup %832 }
 0x121   : > { %v585_v11 = vmul.f32 %v833_v8, %v1337_v12  ;;  %614 = vst [vmem:[%s1380_s20 + $0x40] sm:$0xff] %v598_v9  ;;  %840 = vrsqrt.f32 %v557_v10  ;;  %v539_v34 = vpop.xlane.xlu0 %538 }
 0x122   : > { %v835_v14 = vpop.eup %834  ;;  %v556_v17 = vmax.f32 %v539_v34, 1e-24 }
 0x123   : > { %v601_v15 = vmax.f32 %v585_v11, 0.0  ;;  %v584_v55 = vmul.f32 %v835_v14, %v1347_v30 }
 0x124   : > { %842 = vrsqrt.f32 %v556_v17 }
 0x125   : > { %617 = vst [vmem:[%s1380_s20 + $0x58] sm:$0xff] %v601_v15  ;;  %v837_v18 = vpop.eup %836  ;;  %v600_v19 = vmax.f32 %v584_v55, 0.0 }
 0x126   : > { %v587_v20 = vmul.f32 %v837_v18, %v1355_v45 }
 0x127   : > { %616 = vst [vmem:[%s1380_s20 + $0x50] sm:$0xff] %v600_v19 }
 0x128   : > { %v603_v21 = vmax.f32 %v587_v20, 0.0 }
 0x129   : > { %v839_v12 = vpop.eup %838 }
 0x12a   : > { %v586_v23 = vmul.f32 %v839_v12, %v1362_v54  ;;  %619 = vst [vmem:[%s1380_s20 + $0x68] sm:$0xff] %v603_v21 }
 0x12b   : > { %v841_v24 = vpop.eup %840 }
 0x12c   : > { %v602_v25 = vmax.f32 %v586_v23, 0.0  ;;  %v589_v30 = vmul.f32 %v841_v24, %v1367_v63 }
 0x12e   : > { %618 = vst [vmem:[%s1380_s20 + $0x60] sm:$0xff] %v602_v25  ;;  %v843_v26 = vpop.eup %842  ;;  %v605_v27 = vmax.f32 %v589_v30, 0.0 }
 0x12f   : > { %v588_v45 = vmul.f32 %v843_v26, %v1372_v4 }
 0x130   : > { %621 = vst [vmem:[%s1380_s20 + $0x78] sm:$0xff] %v605_v27 }
 0x131   : > { %v604_v54 = vmax.f32 %v588_v45, 0.0 }
 0x133   : > { %620 = vst [vmem:[%s1380_s20 + $0x70] sm:$0xff] %v604_v54 }
 0x134   : > { %917 = shalt.err (!%p914_p3)
}
 0x135   : > { %s918_s14 = scalar_lea.hbm %s1416_s26, 2048  ;;  %s922_s19 = scalar_lea.hbm %s1465_s2, 4096 }
 0x136   : > { %p919_p12 = scmp.ne.s32.totalorder %s1416_s26, %s918_s14  ;;  %p923_p2 = scmp.lt.u32.totalorder %s1416_s26, %s1465_s2 }
 0x137   : > { %p924_p4 = scmp.lt.u32.totalorder %s922_s19, %s918_s14  ;;  %p926_p13 = scmp.lt.u32.totalorder %s918_s14, %s1416_s26 }
 0x138   : > { %p920_p8 = pnand %p919_p12, %p1475_p1 }
 0x139   : > { %p925_p6 = por %p924_p4, %p923_p2 }
 0x13a   : > { %p921_p0 = pneg %p920_p8 }
 0x13b   : > { %p927_p11 = por %p926_p13, %p925_p6 }
 0x13d   : > { %p928_p10 = pnand %p927_p11, %p921_p0 }
 0x13f   : > { %931 = shalt.err (!%p928_p10)
}
 0x140   : > { %s983_s3 = smov 128   ;;  %s984_s5 = smov 8  }
 0x141   : > { %759 = dma.vmem_to_hbm [thread:$0]  (%p1475_p1), %s1418_s17, 2048, %s1416_s26, %s623_s27, %s983_s3, %s983_s3, %s984_s5  }
 0x142 PF: > { %s651_s20 = sand.u32 1, %s962_s9   ;;  %p1476_p5 = scmp.ne.s32.totalorder %s1471_s22, 0 }
 0x143   : > { %p1477_p7 = scmp.ge.s32.totalorder %s974_s12, 2  ;;  %s652_s8 = scalar_lea.sflag [#allocation4], %s651_s20 }
 0x145   : > { %p769_p9 = pnand %p1477_p7, %p1476_p5 }
 0x147   : > { %957 = dma.done.wait (!%p769_p9), %s652_s8, 2048  }
 0x148   : > { %959 = vsyncadd (!%p769_p9), %s652_s8, 4294965248  ;;  %p18_p3 = scmp.ge.s32.totalorder %s1025_s15, 4   ;;  %s1478_s9 = smov %s966_s10 }
 0x149   : > { %s1479_s10 = smov %s970_s11  ;;  %s1480_s11 = smov %s1037_s18 }
 0x14a   : > { %s1481_s12 = smov %s1025_s15  ;;  %20 = sbr.rel (!%p18_p3) target bundleno = 7 (0x7), region = 86 }
 0x151   :  { %657 = vsyncpa [#allocation3], 1 }
 0x152   :  { %659 = vsyncpa [#allocation3 + $0x1], 1 }
 0x153   :  { %660 = vsyncpa [#allocation6], 1 }
 0x154   :  { %662 = vsyncpa [#allocation6 + $0x1], 1 }
 0x155   :  { %663 = vsyncpa [#allocation4], 1 }
 0x156   :  { %665 = vsyncpa [#allocation4 + $0x1], 1 }

</bundles_post_ra>
